<compile_context>
chip_gen: v7x
topology: tpu7x:2x2x1
jax: 0.10.0
libtpu: 0.0.40
codegen_flags: <defaults>
</compile_context>

<pallas_src>
import functools
import math

import jax
import jax.numpy as jnp
from jax import lax
from jax.experimental import pallas as pl
from jax.experimental.pallas import tpu as pltpu


def _round_up(x, m):
    return (x + m - 1) // m * m


def gat_kernel(flags_ref, dstterm_ref, srcterm_ref, adj_ref, z_ref, out_ref,
               *, tile_s, chunk, z_resident):
    # flags_ref   : (grid_d*grid_s,) int32 SMEM  "tile has at least one edge"
    # dstterm_ref : (TD, 1)   f32   z_d . a_dst for this dest tile
    # srcterm_ref : (1, TS)   f32   z_s . a_src for this src tile
    # adj_ref     : (TD, TS)  int8  adj_t[d, s] = 1 iff edge s -> d
    # z_ref       : (N_pad_s, Dp) bf16 if resident, else (TS, Dp) bf16
    # out_ref     : (TD, Dp)  f32   aggregated dest features (resident across the src axis)
    d = pl.program_id(0)
    s = pl.program_id(1)
    n_s = pl.num_programs(1)

    @pl.when(s == 0)
    def _():
        out_ref[...] = jnp.zeros_like(out_ref)

    # Tile-level sparsity skip: no edges in this (dest, src) tile -> no VPU/EUP/MXU work.
    @pl.when(flags_ref[d * n_s + s] != 0)
    def _():
        dst_t = dstterm_ref[...]                          # (TD, 1) f32
        td = dst_t.shape[0]
        dp = out_ref.shape[1]
        n_chunks = tile_s // chunk

        # Base offset of this src tile inside the (possibly fully resident) z buffer.
        if z_resident:
            z_base = pl.multiple_of(s * tile_s, tile_s)
        else:
            z_base = 0

        acc = jnp.zeros((td, dp), jnp.float32)
        # Strip-mine the src axis: bounds the (TD, chunk) e/alpha temporaries while keeping
        # the MXU contraction depth at `chunk` >= MXU depth. n_chunks is small and static,
        # so this is a fully unrolled loop with static lane-axis slices (zero-cost views).
        for j in range(n_chunks):
            c0 = j * chunk
            # e[d, s] = leaky_relu(z_s.a_src + z_d.a_dst)  -- f32 elementwise (VPU), safe on v5e.
            # (On v6e/v7x this chain could run in bf16 for ~2x fewer vregs; kept f32 for
            #  generation-agnostic correctness.)
            e = dst_t + srcterm_ref[:, c0:c0 + chunk]     # (TD,1)+(1,chunk) -> (TD,chunk)
            e = jnp.where(e >= 0, e, 0.01 * e)            # leaky_relu (slope 0.01)
            # sigmoid via a single EUP transcendental: sigmoid(x) = 0.5*tanh(0.5*x) + 0.5
            alpha = 0.5 * jnp.tanh(0.5 * e) + 0.5
            alpha = jnp.where(adj_ref[:, c0:c0 + chunk] != 0, alpha, 0.0)
            zc = z_ref[pl.ds(z_base + c0, chunk), :]      # (chunk, Dp) bf16
            # out[d, :] += sum_s alpha[d, s] * z[s, :]  -- bf16 MXU inputs, f32 accumulation.
            acc = acc + jnp.dot(alpha.astype(jnp.bfloat16), zc,
                                preferred_element_type=jnp.float32)

        out_ref[...] += acc


def gat_layer(h, w_fc, a_attn, adj, *, tile_d=512, tile_s=2048, chunk=512,
              z_resident_bytes=4 * 1024 * 1024):
    """GAT layer forward.

    h      : (N, in_dim) f32       node features
    w_fc   : (out_dim, in_dim) f32 nn.Linear(in_dim, out_dim, bias=False).weight
    a_attn : (1, 2*out_dim) f32    nn.Linear(2*out_dim, 1, bias=False).weight
    adj    : (N, N)                adj[s, d] != 0 iff edge s -> d
    returns: (N, out_dim) f32
    """
    N, _ = h.shape
    out_dim = w_fc.shape[0]

    # ---- hoisted projection + per-node attention scalar terms (plain XLA) ----
    z = (h @ w_fc.T).astype(jnp.float32)          # (N, D)
    a_src = a_attn[0, :out_dim]                   # applied to the edge source
    a_dst = a_attn[0, out_dim:]                   # applied to the edge destination
    src_term = z @ a_src                          # (N,)
    dst_term = z @ a_dst                          # (N,)

    # ---- pad to lane/sublane friendly, tile-divisible sizes (per-axis, no lcm blow-up) ----
    D_pad = _round_up(out_dim, 128)               # lane-dense output (>=128 wide); no more
    n128 = _round_up(max(N, 1), 128)
    tile_d = min(tile_d, n128)
    tile_s = min(tile_s, n128)
    chunk = min(chunk, tile_s)
    assert tile_d % 128 == 0 and tile_s % 128 == 0 and chunk % 128 == 0
    assert tile_s % chunk == 0

    N_pad_d = _round_up(N, tile_d)
    N_pad_s = _round_up(N, tile_s)
    grid_d = N_pad_d // tile_d
    grid_s = N_pad_s // tile_s

    z_p = jnp.zeros((N_pad_s, D_pad), jnp.bfloat16).at[:N, :out_dim].set(
        z.astype(jnp.bfloat16))                   # bf16 MXU operand, f32 accumulate
    src_p = jnp.zeros((1, N_pad_s), jnp.float32).at[0, :N].set(src_term)
    dst_p = jnp.zeros((N_pad_d, 1), jnp.float32).at[:N, 0].set(dst_term)
    # adj[s, d] -> adj_t[d, s] as int8 (cuts the only O(N^2) HBM stream by 4x vs f32)
    adj_t = jnp.zeros((N_pad_d, N_pad_s), jnp.int8).at[:N, :N].set(
        (adj.T != 0).astype(jnp.int8))

    # per-(dest_tile, src_tile) "has any edge" flags, flattened 1-D for cheap SMEM padding.
    flags = adj_t.reshape(grid_d, tile_d, grid_s, tile_s).max(axis=(1, 3))
    flags = flags.astype(jnp.int32).reshape(grid_d * grid_s)

    # Keep z fully VMEM-resident (loaded once, constant block index) when small enough;
    # otherwise stream a (tile_s, D_pad) block per src step.
    z_resident = (N_pad_s * D_pad * 2) <= z_resident_bytes
    if z_resident:
        z_spec = pl.BlockSpec((N_pad_s, D_pad), lambda d, s, fl: (0, 0))
    else:
        z_spec = pl.BlockSpec((tile_s, D_pad), lambda d, s, fl: (s, 0))

    kernel = functools.partial(gat_kernel, tile_s=tile_s, chunk=chunk,
                               z_resident=z_resident)

    z_bytes = N_pad_s * D_pad * 2 * (1 if z_resident else grid_d)
    cost = pl.CostEstimate(
        flops=2 * N_pad_d * N_pad_s * D_pad + 6 * N_pad_d * N_pad_s,
        transcendentals=N_pad_d * N_pad_s,                 # one tanh per edge slot
        bytes_accessed=(N_pad_d * N_pad_s                  # adj (int8)
                        + z_bytes                          # z (bf16)
                        + N_pad_d * D_pad * 4              # out
                        + (N_pad_d + grid_d * N_pad_s) * 4),
    )

    out_pad = pl.pallas_call(
        kernel,
        out_shape=jax.ShapeDtypeStruct((N_pad_d, D_pad), jnp.float32),
        grid_spec=pltpu.PrefetchScalarGridSpec(
            num_scalar_prefetch=1,
            grid=(grid_d, grid_s),
            in_specs=[
                pl.BlockSpec((tile_d, 1), lambda d, s, fl: (d, 0)),        # dst_term
                pl.BlockSpec((1, tile_s), lambda d, s, fl: (0, s)),        # src_term
                pl.BlockSpec((tile_d, tile_s), lambda d, s, fl: (d, s)),   # adj_t (int8)
                z_spec,                                                    # z (bf16)
            ],
            out_specs=pl.BlockSpec((tile_d, D_pad), lambda d, s, fl: (d, 0)),
        ),
        compiler_params=pltpu.CompilerParams(
            dimension_semantics=("parallel", "arbitrary"),
            vmem_limit_bytes=40 * 1024 * 1024,   # fits v7x's 64 MiB with headroom
        ),
        cost_estimate=cost,
    )(flags, dst_p, src_p, adj_t, z_p)

    return out_pad[:N, :out_dim]


def gat_ref(h, w_fc, a_attn, adj):
    """Pure-JAX f32 reference of the module's exact forward math."""
    out_dim = w_fc.shape[0]
    z = h @ w_fc.T
    a_src = a_attn[0, :out_dim]
    a_dst = a_attn[0, out_dim:]
    e = (z @ a_src[:, None]) + (z @ a_dst[:, None]).T     # e[s, d]
    e = jnp.where(e >= 0, e, 0.01 * e)                    # leaky_relu
    alpha = jax.nn.sigmoid(e) * adj                       # mask non-edges (binary adjacency)
    return alpha.T @ z                                    # out[d] = sum_s alpha[s,d] z[s]


if __name__ == "__main__":
    N, in_dim, out_dim = 16, 16, 32

    key = jax.random.PRNGKey(0)
    k_h, k_w, k_a, k_g = jax.random.split(key, 4)

    # Node features (N, in_dim).
    h = jax.random.normal(k_h, (N, in_dim), dtype=jnp.float32)

    # fc: nn.Linear(in_dim, out_dim, bias=False) -> weight (out_dim, in_dim).
    w_fc = jax.random.normal(k_w, (out_dim, in_dim), dtype=jnp.float32) * 0.1

    # attn_fc: nn.Linear(2*out_dim, 1, bias=False) -> weight (1, 2*out_dim).
    a_attn = jax.random.normal(k_a, (1, 2 * out_dim), dtype=jnp.float32) * 0.1

    # Graph: random directed edges + self loops, as a dense mask adj[s, d].
    adj = jax.random.bernoulli(k_g, 0.4, (N, N)).astype(jnp.float32)
    adj = jnp.maximum(adj, jnp.eye(N, dtype=jnp.float32))

    out = gat_layer(h, w_fc, a_attn, adj)
    out = jax.block_until_ready(out)

    ref = gat_ref(h, w_fc, a_attn, adj)
    assert out.shape == (N, out_dim)
    # bf16 MXU inputs (alpha, z) => compare at bf16-level tolerance.
    assert jnp.allclose(out, ref, atol=2e-2, rtol=2e-2), "mismatch vs reference"

    print("KERNEL_OK")
</pallas_src>

<mosaic_0001>
module attributes {stable_mosaic.version = 11 : i64} {
  func.func @gat_kernel(%arg0: i32, %arg1: i32, %arg2: memref<1xi32, #tpu.memory_space<smem>>, %arg3: memref<128x1xf32, #tpu.memory_space<vmem>>, %arg4: memref<1x128xf32, #tpu.memory_space<vmem>>, %arg5: memref<128x128xi8, #tpu.memory_space<vmem>>, %arg6: memref<128x128xbf16, #tpu.memory_space<vmem>>, %arg7: memref<128x128xf32, #tpu.memory_space<vmem>>) attributes {dimension_semantics = [#tpu.dimension_semantics<parallel>, #tpu.dimension_semantics<arbitrary>], iteration_bounds = array<i64: 1, 1>, scalar_prefetch = 1 : i64, scratch_operands = 0 : i64, tpu.core_type = #tpu.core_type<tc>, window_params = [{transform_indices = @transform_0, window_bounds = array<i64: 128, 1>}, {transform_indices = @transform_1, window_bounds = array<i64: 1, 128>}, {transform_indices = @transform_2, window_bounds = array<i64: 128, 128>}, {pipeline_mode = #tpu.pipeline_mode<synchronous>, transform_indices = @transform_3, window_bounds = array<i64: 128, 128>}, {transform_indices = @transform_4, window_bounds = array<i64: 128, 128>}]} {
    %c0_i32 = arith.constant 0 : i32
    %0 = arith.cmpi eq, %arg1, %c0_i32 : i32
    %1 = arith.extui %0 : i1 to i32
    %c0_i32_0 = arith.constant 0 : i32
    %2 = arith.cmpi ne, %1, %c0_i32_0 : i32
    scf.if %2 {
      %cst = arith.constant 0.000000e+00 : f32
      %10 = vector.broadcast %cst : f32 to vector<128x128xf32>
      %c0 = arith.constant 0 : index
      %c0_3 = arith.constant 0 : index
      %11 = vector.load %arg7[%c0, %c0_3] : memref<128x128xf32, #tpu.memory_space<vmem>>, vector<128x128xf32>
      tpu.vector_store %arg7[%c0, %c0_3], %10 {strides = array<i32>} : memref<128x128xf32, #tpu.memory_space<vmem>>, vector<128x128xf32>,
    } else {
    }
    %c1_i32 = arith.constant 1 : i32
    %3 = arith.muli %arg0, %c1_i32 : i32
    %4 = arith.addi %3, %arg1 : i32
    %5 = arith.index_cast %4 : i32 to index
    %6 = memref.load %arg2[%5] : memref<1xi32, #tpu.memory_space<smem>>
    %c0_i32_1 = arith.constant 0 : i32
    %7 = arith.cmpi ne, %6, %c0_i32_1 : i32
    %8 = arith.extui %7 : i1 to i32
    %c0_i32_2 = arith.constant 0 : i32
    %9 = arith.cmpi ne, %8, %c0_i32_2 : i32
    scf.if %9 {
      %c0 = arith.constant 0 : index
      %c0_3 = arith.constant 0 : index
      %10 = vector.load %arg3[%c0, %c0_3] : memref<128x1xf32, #tpu.memory_space<vmem>>, vector<128x1xf32>
      %c128_i32 = arith.constant 128 : i32
      %11 = arith.muli %arg1, %c128_i32 : i32
      %12 = tpu.assume_multiple %11, 128 : i32
      %cst = arith.constant 0.000000e+00 : f32
      %13 = vector.broadcast %cst : f32 to vector<128x128xf32>
      %c0_4 = arith.constant 0 : index
      %c0_5 = arith.constant 0 : index
      %14 = vector.load %arg4[%c0_4, %c0_5] : memref<1x128xf32, #tpu.memory_space<vmem>>, vector<1x128xf32>
      %15 = vector.broadcast %10 : vector<128x1xf32> to vector<128x128xf32>
      %16 = vector.broadcast %14 : vector<1x128xf32> to vector<128x128xf32>
      %17 = arith.addf %15, %16 : vector<128x128xf32>
      %cst_6 = arith.constant 0.000000e+00 : f32
      %18 = vector.broadcast %cst_6 : f32 to vector<128x128xf32>
      %19 = arith.cmpf oge, %17, %18 : vector<128x128xf32>
      %cst_7 = arith.constant 0.00999999977 : f32
      %20 = vector.broadcast %cst_7 : f32 to vector<128x128xf32>
      %21 = arith.mulf %20, %17 : vector<128x128xf32>
      %22 = arith.select %19, %17, %21 : vector<128x128xi1>, vector<128x128xf32>
      %cst_8 = arith.constant 5.000000e-01 : f32
      %23 = vector.broadcast %cst_8 : f32 to vector<128x128xf32>
      %24 = arith.mulf %23, %22 : vector<128x128xf32>
      %25 = math.tanh %24 : vector<128x128xf32>
      %cst_9 = arith.constant 5.000000e-01 : f32
      %26 = vector.broadcast %cst_9 : f32 to vector<128x128xf32>
      %27 = arith.mulf %26, %25 : vector<128x128xf32>
      %cst_10 = arith.constant 5.000000e-01 : f32
      %28 = vector.broadcast %cst_10 : f32 to vector<128x128xf32>
      %29 = arith.addf %27, %28 : vector<128x128xf32>
      %c0_11 = arith.constant 0 : index
      %c0_12 = arith.constant 0 : index
      %30 = vector.load %arg5[%c0_11, %c0_12] : memref<128x128xi8, #tpu.memory_space<vmem>>, vector<128x128xi8>
      %c0_i8 = arith.constant 0 : i8
      %31 = vector.broadcast %c0_i8 : i8 to vector<128x128xi8>
      %32 = arith.cmpi ne, %30, %31 : vector<128x128xi8>
      %cst_13 = arith.constant 0.000000e+00 : f32
      %33 = vector.broadcast %cst_13 : f32 to vector<128x128xf32>
      %34 = arith.select %32, %29, %33 : vector<128x128xi1>, vector<128x128xf32>
      %c0_i32_14 = arith.constant 0 : i32
      %35 = arith.addi %12, %c0_i32_14 : i32
      %36 = arith.index_cast %35 : i32 to index
      %c0_15 = arith.constant 0 : index
      %37 = vector.load %arg6[%36, %c0_15] : memref<128x128xbf16, #tpu.memory_space<vmem>>, vector<128x128xbf16>
      %38 = arith.truncf %34 : vector<128x128xf32> to vector<128x128xbf16>
      %cst_16 = arith.constant dense<0.000000e+00> : vector<128x128xf32>
      %39 = tpu.matmul %38, %37, %cst_16 {dimension_numbers = #tpu.dot_dimension_numbers<[1], [0], [0], [1], [0, 0, 1, 1], [], []>} : vector<128x128xbf16>, vector<128x128xbf16>, vector<128x128xf32> -> vector<128x128xf32>
      %40 = arith.addf %13, %39 : vector<128x128xf32>
      %c0_17 = arith.constant 0 : index
      %c0_18 = arith.constant 0 : index
      %41 = vector.load %arg7[%c0_17, %c0_18] : memref<128x128xf32, #tpu.memory_space<vmem>>, vector<128x128xf32>
      %42 = arith.addf %41, %40 : vector<128x128xf32>
      %c0_19 = arith.constant 0 : index
      %c0_20 = arith.constant 0 : index
      %43 = vector.load %arg7[%c0_19, %c0_20] : memref<128x128xf32, #tpu.memory_space<vmem>>, vector<128x128xf32>
      tpu.vector_store %arg7[%c0_19, %c0_20], %42 {strides = array<i32>} : memref<128x128xf32, #tpu.memory_space<vmem>>, vector<128x128xf32>,
    } else {
    }
    return
  }
  func.func @transform_0(%arg0: i32, %arg1: i32, %arg2: memref<1xi32, #tpu.memory_space<smem>>) -> (i32, i32) {
    %c0_i32 = arith.constant 0 : i32
    %c0_i32_0 = arith.constant 0 : i32
    return %arg0, %c0_i32 : i32, i32
  }
  func.func @transform_1(%arg0: i32, %arg1: i32, %arg2: memref<1xi32, #tpu.memory_space<smem>>) -> (i32, i32) {
    %c0_i32 = arith.constant 0 : i32
    %c0_i32_0 = arith.constant 0 : i32
    return %c0_i32, %arg1 : i32, i32
  }
  func.func @transform_2(%arg0: i32, %arg1: i32, %arg2: memref<1xi32, #tpu.memory_space<smem>>) -> (i32, i32) {
    %c0_i32 = arith.constant 0 : i32
    return %arg0, %arg1 : i32, i32
  }
  func.func @transform_3(%arg0: i32, %arg1: i32, %arg2: memref<1xi32, #tpu.memory_space<smem>>) -> (i32, i32) {
    %c0_i32 = arith.constant 0 : i32
    %c0_i32_0 = arith.constant 0 : i32
    %c0_i32_1 = arith.constant 0 : i32
    return %c0_i32, %c0_i32_0 : i32, i32
  }
  func.func @transform_4(%arg0: i32, %arg1: i32, %arg2: memref<1xi32, #tpu.memory_space<smem>>) -> (i32, i32) {
    %c0_i32 = arith.constant 0 : i32
    %c0_i32_0 = arith.constant 0 : i32
    return %arg0, %c0_i32 : i32, i32
  }
}

</mosaic_0001>

<bundles_post_ra>
// kernel: tpu_custom_call.1
= control target key start
LH: loop header
LB: loop body
LE: loop exit
PB: predicated region body
PF: predicated region fallthrough
CT: control target
= control target key end

     0   :  { %11 = vsyncpa [#allocation5], 0  ;;  %v829_v0 = vmov 0.0   ;;  %s1220_s0 = inlined_call_operand.<no memory space> [shape: s32[1], index: 0, kind: input, shape index: {}]   ;;  %s1221_s1 = inlined_call_operand.vmem [shape: f32[128,1], index: 1, kind: input, shape index: {}]   ;;  %s1222_s2 = inlined_call_operand.vmem [shape: f32[1,128], index: 2, kind: input, shape index: {}]   ;;  %s1223_s3 = inlined_call_operand.vmem [shape: s8[128,128], index: 3, kind: input, shape index: {}]   ;;  %s1224_s4 = inlined_call_operand.vmem [shape: bf16[128,128], index: 4, kind: input, shape index: {}]   ;;  %s1225_s5 = inlined_call_operand.hbm [shape: f32[128,128], index: 5, kind: output, shape index: {}]  }
   0x1   :  { %27 = vst [vmem:[#allocation4] sm:$0xff] %v829_v0  ;;  %28 = vst [vmem:[#allocation4 + $0x8] sm:$0xff] %v829_v0  ;;  %p660_p0 = scmp.eq.s32.totalorder %s1220_s0, 0 }
   0x2   :  { %29 = vst [vmem:[#allocation4 + $0x10] sm:$0xff] %v829_v0  ;;  %30 = vst [vmem:[#allocation4 + $0x18] sm:$0xff] %v829_v0  ;;  %v57_v1 = vld [vmem:[%s1221_s1 + $0x40] sm:$0xff] (!%p660_p0)  ;;  %v830_v3 = vmov (!%p660_p0), 0   ;;  %v58_v4 = vld [vmem:[%s1221_s1 + $0x48] sm:$0xff] (!%p660_p0) }
   0x3   :  { %31 = vst [vmem:[#allocation4 + $0x20] sm:$0xff] %v829_v0  ;;  %32 = vst [vmem:[#allocation4 + $0x28] sm:$0xff] %v829_v0  ;;  %48 = sbr.rel (%p660_p0) target bundleno = 404 (0x194), region = 25  ;;  %v49_v2 = vld [vmem:[%s1221_s1] sm:$0xff] (!%p660_p0)  ;;  %764 = vset.pattern.permute.xlu1 (!%p660_p0), %v830_v3  ;;  %763 = vset.pattern.permute.xlu0 (!%p660_p0), %v830_v3  ;;  %v50_v5 = vld [vmem:[%s1221_s1 + $0x8] sm:$0xff] (!%p660_p0) }
   0x4   :  { %33 = vst [vmem:[#allocation4 + $0x30] sm:$0xff] %v829_v0  ;;  %34 = vst [vmem:[#allocation4 + $0x38] sm:$0xff] %v829_v0  ;;  %109 = vperm.xlu1 (!%p660_p0), %764, %v57_v1   ;;  %69 = vperm.xlu0 (!%p660_p0), %763, %v49_v2   ;;  %v52_v6 = vld [vmem:[%s1221_s1 + $0x18] sm:$0xff] (!%p660_p0)  ;;  %v51_v7 = vld [vmem:[%s1221_s1 + $0x10] sm:$0xff] (!%p660_p0) }
   0x5   :  { %35 = vst [vmem:[#allocation4 + $0x40] sm:$0xff] %v829_v0  ;;  %36 = vst [vmem:[#allocation4 + $0x48] sm:$0xff] %v829_v0  ;;  %v765_v8 = vld [vmem:[%s1224_s4] sm:$0xff] (!%p660_p0)   ;;  %v766_v9 = vld [vmem:[%s1224_s4 + $0x8] sm:$0xff] (!%p660_p0)  }
   0x6   :  { %37 = vst [vmem:[#allocation4 + $0x50] sm:$0xff] %v829_v0  ;;  %38 = vst [vmem:[#allocation4 + $0x58] sm:$0xff] %v829_v0  ;;  %710 = vmatprep.subr.bf16.mxu0 (!%p660_p0), %v765_v8  ;;  %742 = vmatprep.subr.bf16.mxu1 (!%p660_p0), %v765_v8  ;;  %v60_v10 = vld [vmem:[%s1221_s1 + $0x58] sm:$0xff] (!%p660_p0)  ;;  %v59_v11 = vld [vmem:[%s1221_s1 + $0x50] sm:$0xff] (!%p660_p0) }
   0x7   :  { %39 = vst [vmem:[#allocation4 + $0x60] sm:$0xff] %v829_v0  ;;  %40 = vst [vmem:[#allocation4 + $0x68] sm:$0xff] %v829_v0  ;;  %711 = vmatpush3.bf16.msra.mxu0 (!%p660_p0), %v765_v8  ;;  %750 = vmatpush3.bf16.msra.mxu1 (!%p660_p0), %v765_v8  ;;  %v767_v12 = vld [vmem:[%s1224_s4 + $0x10] sm:$0xff] (!%p660_p0)   ;;  %v54_v13 = vld [vmem:[%s1221_s1 + $0x28] sm:$0xff] (!%p660_p0) }
   0x8   :  { %41 = vst [vmem:[#allocation4 + $0x70] sm:$0xff] %v829_v0  ;;  %42 = vst [vmem:[#allocation4 + $0x78] sm:$0xff] %v829_v0  ;;  %114 = vperm.xlu1 (!%p660_p0), %764, %v58_v4   ;;  %74 = vperm.xlu0 (!%p660_p0), %763, %v50_v5   ;;  %v53_v14 = vld [vmem:[%s1221_s1 + $0x20] sm:$0xff] (!%p660_p0)  ;;  %v768_v15 = vld [vmem:[%s1224_s4 + $0x18] sm:$0xff] (!%p660_p0)  }
   0x9   :  { %712 = vmatprep.subr.bf16.mxu0 (!%p660_p0), %v766_v9  ;;  %743 = vmatprep.subr.bf16.mxu1 (!%p660_p0), %v766_v9  ;;  %v62_v16 = vld [vmem:[%s1221_s1 + $0x68] sm:$0xff] (!%p660_p0)  ;;  %v61_v17 = vld [vmem:[%s1221_s1 + $0x60] sm:$0xff] (!%p660_p0)  ;;  %v56_v19 = vld [vmem:[%s1221_s1 + $0x38] sm:$0xff] (!%p660_p0) }
   0xa   :  { %v769_v18 = vld [vmem:[%s1224_s4 + $0x20] sm:$0xff]   ;;  %v55_v20 = vld [vmem:[%s1221_s1 + $0x30] sm:$0xff]  ;;  %v770_v21 = vld [vmem:[%s1224_s4 + $0x28] sm:$0xff]  }
   0xb   :  { %713 = vmatpush3.bf16.msra.mxu0 %v766_v9  ;;  %751 = vmatpush3.bf16.msra.mxu1 %v766_v9  ;;  %v64_v22 = vld [vmem:[%s1221_s1 + $0x78] sm:$0xff]  ;;  %v63_v23 = vld [vmem:[%s1221_s1 + $0x70] sm:$0xff]  ;;  %v281_v26 = vld [vmem:[%s1223_s3] sm:$0xff] }
   0xc   :  { %84 = vperm.xlu1 %764, %v52_v6   ;;  %79 = vperm.xlu0 %763, %v51_v7   ;;  %v771_v24 = vld [vmem:[%s1224_s4 + $0x30] sm:$0xff]   ;;  %v772_v25 = vld [vmem:[%s1224_s4 + $0x38] sm:$0xff]   ;;  %vm285_vm0 = vnez %v281_v26  ;;  %v282_v31 = vld [vmem:[%s1223_s3 + $0x8] sm:$0xff] }
   0xd   :  { %714 = vmatprep.subr.bf16.mxu0 %v767_v12  ;;  %744 = vmatprep.subr.bf16.mxu1 %v767_v12  ;;  %v283_v27 = vld [vmem:[%s1223_s3 + $0x10] sm:$0xff]  ;;  %v289_v28 = vsel %vm285_vm0, 16843009, %v830_v3  ;;  %vm286_vm2 = vnez %v282_v31  ;;  %v284_v41 = vld [vmem:[%s1223_s3 + $0x18] sm:$0xff] }
   0xe   :  { %vm287_vm1 = vnez %v283_v27  ;;  %v293_v30 = vunpack.c.0.s8 %v289_v28  ;;  %v294_v32 = vunpack.c.1.s8 %v289_v28  ;;  %v295_v36 = vunpack.c.2.s8 %v289_v28 }
   0xf   :  { %715 = vmatpush3.bf16.msra.mxu0 %v767_v12  ;;  %752 = vmatpush3.bf16.msra.mxu1 %v767_v12  ;;  %v291_v29 = vsel %vm287_vm1, 16843009, %v830_v3  ;;  %v296_v39 = vunpack.c.3.s8 %v289_v28  ;;  %v953_v40 = vsel %vm286_vm2, 16843009, %v830_v3  ;;  %vm288_vm3 = vnez %v284_v41 }
  0x10   :  { %124 = vperm.xlu1 %764, %v60_v10   ;;  %119 = vperm.xlu0 %763, %v59_v11   ;;  %v301_v33 = vunpack.c.0.s8 %v291_v29  ;;  %v309_v34 = vpack.c.b16 %v293_v30, %v293_v30  ;;  %v302_v35 = vunpack.c.1.s8 %v291_v29  ;;  %v311_v37 = vpack.c.b16 %v294_v32, %v294_v32  ;;  %v983_v10 = vld [vmem:[%s1222_s2] ss:$0 sm:$0xff] }
  0x11   :  { %716 = vmatprep.subr.bf16.mxu0 %v768_v15  ;;  %745 = vmatprep.subr.bf16.mxu1 %v768_v15  ;;  %v303_v42 = vunpack.c.2.s8 %v291_v29  ;;  %v304_v43 = vunpack.c.3.s8 %v291_v29  ;;  %v313_v46 = vpack.c.b16 %v295_v36, %v295_v36  ;;  %v297_v47 = vunpack.c.0.s8 %v953_v40 }
  0x12   :  { %v325_v38 = vpack.c.b16 %v301_v33, %v301_v33  ;;  %v310_v44 = vpack.c.b8 %v309_v34, %v309_v34  ;;  %v327_v45 = vpack.c.b16 %v302_v35, %v302_v35  ;;  %v312_v48 = vpack.c.b8 %v311_v37, %v311_v37 }
  0x13   :  { %717 = vmatpush3.bf16.msra.mxu0 %v768_v15  ;;  %753 = vmatpush3.bf16.msra.mxu1 %v768_v15  ;;  %v315_v50 = vpack.c.b16 %v296_v39, %v296_v39  ;;  %v298_v51 = vunpack.c.1.s8 %v953_v40  ;;  %v329_v52 = vpack.c.b16 %v303_v42, %v303_v42  ;;  %v331_v53 = vpack.c.b16 %v304_v43, %v304_v43 }
  0x14   :  { %94 = vperm.xlu1 %764, %v54_v13   ;;  %89 = vperm.xlu0 %763, %v53_v14   ;;  %v326_v49 = vpack.c.b8 %v325_v38, %v325_v38  ;;  %v961_v54 = vsel %vm288_vm3, 16843009, %v830_v3  ;;  %vm341_vm4 = vnez %v310_v44  ;;  %v328_v55 = vpack.c.b8 %v327_v45, %v327_v45 }
  0x15   :  { %718 = vmatprep.subr.bf16.mxu0 %v769_v18  ;;  %746 = vmatprep.subr.bf16.mxu1 %v769_v18  ;;  %v314_v56 = vpack.c.b8 %v313_v46, %v313_v46  ;;  %v317_v57 = vpack.c.b16 %v297_v47, %v297_v47  ;;  %vm342_vm5 = vnez %v312_v48  ;;  %v316_v58 = vpack.c.b8 %v315_v50, %v315_v50 }
  0x16   :  { %vm349_vm6 = vnez %v326_v49  ;;  %v319_v59 = vpack.c.b16 %v298_v51, %v298_v51  ;;  %v330_v60 = vpack.c.b8 %v329_v52, %v329_v52  ;;  %v332_v61 = vpack.c.b8 %v331_v53, %v331_v53 }
  0x17   :  { %719 = vmatpush3.bf16.msra.mxu0 %v769_v18  ;;  %754 = vmatpush3.bf16.msra.mxu1 %v769_v18  ;;  %v305_v62 = vunpack.c.0.s8 %v961_v54  ;;  %v306_v63 = vunpack.c.1.s8 %v961_v54  ;;  %v966_v0 = vsel %vm341_vm4, 16843009, %v830_v3  ;;  %vm350_vm7 = vnez %v328_v55 }
  0x18   :  { %134 = vperm.xlu1 %764, %v62_v16   ;;  %129 = vperm.xlu0 %763, %v61_v17   ;;  %vm343_vm8 = vnez %v314_v56  ;;  %v318_v1 = vpack.c.b8 %v317_v57, %v317_v57  ;;  %v969_v2 = vsel %vm342_vm5, 16843009, %v830_v3  ;;  %v972_v4 = vsel %vm349_vm6, 16843009, %v830_v3 }
  0x19   :  { %720 = vmatprep.subr.bf16.mxu0 %v770_v21  ;;  %747 = vmatprep.subr.bf16.mxu1 %v770_v21  ;;  %vm344_vm9 = vnez %v316_v58  ;;  %v320_v5 = vpack.c.b8 %v319_v59, %v319_v59  ;;  %vm351_vm10 = vnez %v330_v60  ;;  %vm352_vm11 = vnez %v332_v61 }
  0x1a   :  { %v333_v6 = vpack.c.b16 %v305_v62, %v305_v62  ;;  %v335_v7 = vpack.c.b16 %v306_v63, %v306_v63  ;;  %v975_v8 = vsel %vm350_vm7, 16843009, %v830_v3  ;;  %v978_v9 = vsel %vm343_vm8, 16843009, %v830_v3 }
  0x1b   :  { %721 = vmatpush3.bf16.msra.mxu0 %v770_v21  ;;  %755 = vmatpush3.bf16.msra.mxu1 %v770_v21  ;;  %v373_v11 = vunpack.c.0.s8 %v966_v0  ;;  %v374_v12 = vunpack.c.0.s8 %v969_v2  ;;  %v988_v13 = vsel %vm344_vm9, 16843009, %v830_v3  ;;  %vm345_vm12 = vnez %v318_v1 }
  0x1c   :  { %104 = vperm.xlu1 %764, %v56_v19   ;;  %99 = vperm.xlu0 %763, %v55_v20   ;;  %v381_v14 = vunpack.c.0.s8 %v972_v4  ;;  %v992_v15 = vsel %vm351_vm10, 16843009, %v830_v3  ;;  %v995_v16 = vsel %vm352_vm11, 16843009, %v830_v3  ;;  %vm346_vm13 = vnez %v320_v5 }
  0x1d   :  { %722 = vmatprep.subr.bf16.mxu0 %v771_v24  ;;  %748 = vmatprep.subr.bf16.mxu1 %v771_v24  ;;  %v382_v19 = vunpack.c.0.s8 %v975_v8  ;;  %v375_v20 = vunpack.c.0.s8 %v978_v9  ;;  %v334_v21 = vpack.c.b8 %v333_v6, %v333_v6  ;;  %v1003_v26 = vsel %vm345_vm12, 16843009, %v830_v3 }
  0x1e   :  { %v383_v27 = vunpack.c.0.s8 %v992_v15  ;;  %v384_v28 = vunpack.c.0.s8 %v995_v16  ;;  %v1008_v29 = vsel %vm346_vm13, 16843009, %v830_v3  ;;  %v299_v30 = vunpack.c.2.s8 %v953_v40 }
  0x1f   :  { %723 = vmatpush3.bf16.msra.mxu0 %v771_v24  ;;  %756 = vmatpush3.bf16.msra.mxu1 %v771_v24  ;;  %v377_v35 = vunpack.c.0.s8 %v1003_v26  ;;  %vm1012_vm0 = vnez %v334_v21  ;;  %v300_v38 = vunpack.c.3.s8 %v953_v40  ;;  %v378_v46 = vunpack.c.0.s8 %v1008_v29 }
  0x20   :  { %144 = vperm.xlu1 %764, %v64_v22   ;;  %139 = vperm.xlu0 %763, %v63_v23   ;;  %v336_v22 = vpack.c.b8 %v335_v7, %v335_v7  ;;  %v1024_v47 = vpack.c.b16 %v299_v30, %v299_v30  ;;  %v1029_v40 = vsel %vm1012_vm0, 16843009, %v830_v3  ;;  %v307_v53 = vunpack.c.2.s8 %v961_v54 }
  0x21   :  { %724 = vmatprep.subr.bf16.mxu0 %v772_v25  ;;  %749 = vmatprep.subr.bf16.mxu1 %v772_v25  ;;  %v308_v61 = vunpack.c.3.s8 %v961_v54  ;;  %v385_v63 = vunpack.c.0.s8 %v1029_v40  ;;  %v1041_v1 = vpack.c.b16 %v300_v38, %v300_v38  ;;  %vm1064_vm10 = vcmp.ne.s32.totalorder %v373_v11, 0 }
  0x22   :  { %vm1016_vm1 = vnez %v336_v22  ;;  %v322_v37 = vpack.c.b8 %v1024_v47, %v1024_v47  ;;  %vm1070_vm11 = vcmp.ne.s32.totalorder %v374_v12, 0  ;;  %vm1080_vm12 = vcmp.ne.s32.totalorder %v381_v14, 0 }
  0x23   :  { %725 = vmatpush3.bf16.msra.mxu0 %v772_v25  ;;  %757 = vmatpush3.bf16.msra.mxu1 %v772_v25  ;;  %v376_v25 = vunpack.c.0.s8 %v988_v13  ;;  %v1034_v52 = vsel %vm1016_vm1, 16843009, %v830_v3  ;;  %v1048_v30 = vpack.c.b16 %v308_v61, %v308_v61  ;;  %v324_v38 = vpack.c.b8 %v1041_v1, %v1041_v1 }
  0x24   :  { %vm1086_vm13 = vcmp.ne.s32.totalorder %v382_v19, 0  ;;  %vm1092_vm0 = vcmp.ne.s32.totalorder %v375_v20, 0 }
  0x25   :  { %vm1098_vm1 = vcmp.ne.s32.totalorder %v376_v25, 0 }
  0x83   :  { %v110_v17 = vpop.permute.xlu1 %109  ;;  %v70_v18 = vpop.permute.xlu0 %69 }
  0x84   :  { %v161_v23 = vadd.f32 %v983_v10, %v110_v17  ;;  %v153_v24 = vadd.f32 %v983_v10, %v70_v18  ;;  %v386_v17 = vunpack.c.0.s8 %v1034_v52 }
  0x86   :  { %vm177_vm14 = vcmp.ge.f32.partialorder %v161_v23, 0.0  ;;  %v193_v31 = vmul.f32 0.01, %v161_v23  ;;  %vm169_vm15 = vcmp.ge.f32.partialorder %v153_v24, 0.0  ;;  %v185_v32 = vmul.f32 0.01, %v153_v24 }
  0x87   :  { %v115_v33 = vpop.permute.xlu1 %114  ;;  %v75_v34 = vpop.permute.xlu0 %74 }
  0x88   :  { %v209_v39 = vsel %vm177_vm14, %v161_v23, %v193_v31  ;;  %v201_v41 = vsel %vm169_vm15, %v153_v24, %v185_v32  ;;  %v162_v42 = vadd.f32 %v983_v10, %v115_v33  ;;  %v154_v43 = vadd.f32 %v983_v10, %v75_v34 }
  0x89   :  { %v225_v44 = vmul.f32 0.5, %v209_v39  ;;  %v217_v45 = vmul.f32 0.5, %v201_v41  ;;  %v1046_v24 = vpack.c.b16 %v307_v53, %v307_v53 }
  0x8a   :  { %vm178_vm2 = vcmp.ge.f32.partialorder %v162_v42, 0.0  ;;  %v194_v48 = vmul.f32 0.01, %v162_v42  ;;  %vm170_vm3 = vcmp.ge.f32.partialorder %v154_v43, 0.0  ;;  %v186_v49 = vmul.f32 0.01, %v154_v43 }
  0x8b   :  { %773 = vtanh.f32 %v225_v44  ;;  %v85_v50 = vpop.permute.xlu1 %84  ;;  %v80_v51 = vpop.permute.xlu0 %79 }
  0x8c   :  { %775 = vtanh.f32 %v217_v45  ;;  %v210_v55 = vsel %vm178_vm2, %v162_v42, %v194_v48  ;;  %v202_v56 = vsel %vm170_vm3, %v154_v43, %v186_v49  ;;  %v156_v57 = vadd.f32 %v983_v10, %v85_v50 }
  0x8d   :  { %v226_v58 = vmul.f32 0.5, %v210_v55  ;;  %v218_v59 = vmul.f32 0.5, %v202_v56  ;;  %v155_v60 = vadd.f32 %v983_v10, %v80_v51  ;;  %v338_v48 = vpack.c.b8 %v1046_v24, %v1046_v24  ;;  %v609_v24 = vld [vmem:[#allocation4 + $0x78] sm:$0xff] }
  0x8e   :  { %vm172_vm4 = vcmp.ge.f32.partialorder %v156_v57, 0.0  ;;  %v188_v62 = vmul.f32 0.01, %v156_v57  ;;  %v340_v49 = vpack.c.b8 %v1048_v30, %v1048_v30  ;;  %vm1104_vm2 = vcmp.ne.s32.totalorder %v383_v27, 0 }
  0x8f   :  { %777 = vtanh.f32 %v226_v58  ;;  %vm171_vm5 = vcmp.ge.f32.partialorder %v155_v60, 0.0  ;;  %v187_v5 = vmul.f32 0.01, %v155_v60  ;;  %v125_v6 = vpop.permute.xlu1 %124  ;;  %v120_v7 = vpop.permute.xlu0 %119  ;;  %vm1110_vm3 = vcmp.ne.s32.totalorder %v384_v28, 0 }
  0x90   :  { %779 = vtanh.f32 %v218_v59  ;;  %v204_v18 = vsel %vm172_vm4, %v156_v57, %v188_v62  ;;  %v164_v21 = vadd.f32 %v983_v10, %v125_v6  ;;  %v163_v22 = vadd.f32 %v983_v10, %v120_v7 }
  0x91   :  { %v220_v54 = vmul.f32 0.5, %v204_v18  ;;  %v203_v23 = vsel %vm171_vm5, %v155_v60, %v187_v5  ;;  %vm1114_vm4 = vnez %v322_v37  ;;  %vm1120_vm5 = vnez %v324_v38 }
  0x92   :  { %v219_v31 = vmul.f32 0.5, %v203_v23  ;;  %vm180_vm6 = vcmp.ge.f32.partialorder %v164_v21, 0.0  ;;  %v196_v32 = vmul.f32 0.01, %v164_v21  ;;  %vm179_vm7 = vcmp.ge.f32.partialorder %v163_v22, 0.0 }
  0x93   :  { %781 = vtanh.f32 %v220_v54  ;;  %v195_v33 = vmul.f32 0.01, %v163_v22  ;;  %v95_v34 = vpop.permute.xlu1 %94  ;;  %v90_v36 = vpop.permute.xlu0 %89  ;;  %v364_v4 = vsel %vm1120_vm5, 16843009, %v830_v3 }
  0x94   :  { %783 = vtanh.f32 %v219_v31  ;;  %v212_v39 = vsel %vm180_vm6, %v164_v21, %v196_v32  ;;  %v158_v41 = vadd.f32 %v983_v10, %v95_v34  ;;  %v157_v42 = vadd.f32 %v983_v10, %v90_v36 }
  0x95   :  { %v774_v43 = vpop.eup %773  ;;  %v228_v44 = vmul.f32 0.5, %v212_v39  ;;  %v211_v45 = vsel %vm179_vm7, %v163_v22, %v195_v33 }
  0x96   :  { %v776_v50 = vpop.eup %775  ;;  %v227_v47 = vmul.f32 0.5, %v211_v45  ;;  %vm174_vm8 = vcmp.ge.f32.partialorder %v158_v41, 0.0  ;;  %v190_v51 = vmul.f32 0.01, %v158_v41  ;;  %vm173_vm9 = vcmp.ge.f32.partialorder %v157_v42, 0.0 }
  0x97   :  { %785 = vtanh.f32 %v228_v44  ;;  %v189_v53 = vmul.f32 0.01, %v157_v42  ;;  %v135_v55 = vpop.permute.xlu1 %134  ;;  %v130_v56 = vpop.permute.xlu0 %129  ;;  %v249_v57 = vmul.f32 0.5, %v776_v50  ;;  %v257_v58 = vmul.f32 0.5, %v774_v43 }
  0x98   :  { %787 = vtanh.f32 %v227_v47  ;;  %v206_v59 = vsel %vm174_vm8, %v158_v41, %v190_v51  ;;  %v166_v60 = vadd.f32 %v983_v10, %v135_v55  ;;  %v165_v61 = vadd.f32 %v983_v10, %v130_v56 }
  0x99   :  { %v778_v5 = vpop.eup %777  ;;  %v222_v6 = vmul.f32 0.5, %v206_v59  ;;  %v205_v7 = vsel %vm173_vm9, %v157_v42, %v189_v53  ;;  %v1074_v18 = vadd.f32 0.5, %v249_v57  ;;  %v1076_v21 = vadd.f32 0.5, %v257_v58 }
  0x9a   :  { %v780_v11 = vpop.eup %779  ;;  %v221_v12 = vmul.f32 0.5, %v205_v7  ;;  %vm182_vm14 = vcmp.ge.f32.partialorder %v166_v60, 0.0  ;;  %v198_v22 = vmul.f32 0.01, %v166_v60  ;;  %vm181_vm15 = vcmp.ge.f32.partialorder %v165_v61, 0.0 }
  0x9b   :  { %789 = vtanh.f32 %v222_v6  ;;  %v197_v8 = vmul.f32 0.01, %v165_v61  ;;  %v105_v14 = vpop.permute.xlu1 %104  ;;  %v100_v19 = vpop.permute.xlu0 %99  ;;  %v250_v23 = vmul.f32 0.5, %v780_v11  ;;  %v258_v31 = vmul.f32 0.5, %v778_v5 }
  0x9c   :  { %791 = vtanh.f32 %v221_v12  ;;  %v214_v25 = vsel %vm182_vm14, %v166_v60, %v198_v22  ;;  %v160_v32 = vadd.f32 %v983_v10, %v105_v14  ;;  %v159_v15 = vadd.f32 %v983_v10, %v100_v19 }
  0x9d   :  { %v782_v33 = vpop.eup %781  ;;  %v230_v16 = vmul.f32 0.5, %v214_v25  ;;  %v213_v28 = vsel %vm181_vm15, %v165_v61, %v197_v8  ;;  %v266_v34 = vadd.f32 0.5, %v250_v23  ;;  %v274_v36 = vadd.f32 0.5, %v258_v31 }
  0x9e   :  { %v784_v37 = vpop.eup %783  ;;  %v252_v39 = vmul.f32 0.5, %v782_v33  ;;  %v229_v41 = vmul.f32 0.5, %v213_v28  ;;  %vm176_vm6 = vcmp.ge.f32.partialorder %v160_v32, 0.0  ;;  %v192_v42 = vmul.f32 0.01, %v160_v32 }
  0x9f   :  { %v251_v43 = vmul.f32 0.5, %v784_v37  ;;  %793 = vtanh.f32 %v230_v16  ;;  %vm175_vm7 = vcmp.ge.f32.partialorder %v159_v15, 0.0  ;;  %v191_v44 = vmul.f32 0.01, %v159_v15  ;;  %v145_v45 = vpop.permute.xlu1 %144  ;;  %v140_v38 = vpop.permute.xlu0 %139 }
  0xa0   :  { %vm1127_vm8 = vcmp.ne.s32.totalorder %v377_v35, 0  ;;  %vm1133_vm9 = vcmp.ne.s32.totalorder %v378_v46, 0  ;;  %v268_v51 = vadd.f32 0.5, %v252_v39  ;;  %795 = vtanh.f32 %v229_v41 }
  0xa1   :  { %v208_v53 = vsel %vm176_vm6, %v160_v32, %v192_v42  ;;  %v168_v55 = vadd.f32 %v983_v10, %v145_v45  ;;  %v786_v56 = vpop.eup %785  ;;  %v267_v57 = vadd.f32 0.5, %v251_v43  ;;  %v207_v59 = vsel %vm175_vm7, %v159_v15, %v191_v44  ;;  %vm670_vm6 = vmpackc.low %vm1070_vm11, %vm1064_vm10 }
  0xa2   :  { %v224_v58 = vmul.f32 0.5, %v208_v53  ;;  %v167_v26 = vadd.f32 %v983_v10, %v140_v38  ;;  %v788_v35 = vpop.eup %787  ;;  %v260_v60 = vmul.f32 0.5, %v786_v56  ;;  %v223_v61 = vmul.f32 0.5, %v207_v59  ;;  %vm682_vm7 = vmpackc.low %vm1086_vm13, %vm1080_vm12  ;;  %v594_v53 = vld [vmem:[#allocation4] sm:$0xff] }
  0xa3   :  { %vm184_vm14 = vcmp.ge.f32.partialorder %v168_v55, 0.0  ;;  %v200_v29 = vmul.f32 0.01, %v168_v55  ;;  %v259_v46 = vmul.f32 0.5, %v788_v35  ;;  %v671_v11 = vpack.c.bf16 %v266_v34, %v1074_v18  ;;  %vm673_vm10 = vmpackc.low %vm1098_vm1, %vm1092_vm0  ;;  %v595_v35 = vld [vmem:[#allocation4 + $0x8] sm:$0xff] }
  0xa4   :  { %797 = vtanh.f32 %v224_v58  ;;  %vm183_vm15 = vcmp.ge.f32.partialorder %v167_v26, 0.0  ;;  %v199_v5 = vmul.f32 0.01, %v167_v26  ;;  %v276_v6 = vadd.f32 0.5, %v260_v60  ;;  %vm685_vm11 = vmpackc.low %vm1110_vm3, %vm1104_vm2  ;;  %v602_v58 = vld [vmem:[#allocation4 + $0x40] sm:$0xff] }
  0xa5   :  { %799 = vtanh.f32 %v223_v61  ;;  %v216_v7 = vsel %vm184_vm14, %v168_v55, %v200_v29  ;;  %v790_v10 = vpop.eup %789  ;;  %v275_v12 = vadd.f32 0.5, %v259_v46  ;;  %v683_v14 = vpack.c.bf16 %v274_v36, %v1076_v21  ;;  %726 = vmatprep.mubr.msk.bf16.mxu0 %vm670_vm6, %v671_v11  ;;  %vm676_vm13 = vmpackc.low %vm1133_vm9, %vm1127_vm8  ;;  %v604_v55 = vld [vmem:[#allocation4 + $0x50] sm:$0xff]  ;;  %v605_v61 = vld [vmem:[#allocation4 + $0x58] sm:$0xff] }
  0xa6   :  { %v232_v22 = vmul.f32 0.5, %v216_v7  ;;  %v215_v8 = vsel %vm183_vm15, %v167_v26, %v199_v5  ;;  %v792_v62 = vpop.eup %791  ;;  %v254_v1 = vmul.f32 0.5, %v790_v10  ;;  %v674_v18 = vpack.c.bf16 %v268_v51, %v267_v57  ;;  %v596_v51 = vld [vmem:[#allocation4 + $0x10] sm:$0xff]  ;;  %v597_v57 = vld [vmem:[#allocation4 + $0x18] sm:$0xff]  ;;  %v603_v7 = vld [vmem:[#allocation4 + $0x48] sm:$0xff] }
  0xa7   :  { %v231_v19 = vmul.f32 0.5, %v215_v8  ;;  %v363_v23 = vsel %vm1114_vm4, 16843009, %v830_v3  ;;  %v253_v21 = vmul.f32 0.5, %v792_v62  ;;  %734 = vmatprep.mubr.msk.bf16.mxu1 %vm682_vm7, %v683_v14  ;;  %v686_v54 = vpack.c.bf16 %v276_v6, %v275_v12 }
  0xa8   :  { %801 = vtanh.f32 %v232_v22  ;;  %v270_v31 = vadd.f32 0.5, %v254_v1  ;;  %727 = vmatmul.mubr.msk.bf16.vlgmr.msra.gmra.mrb[0].mxu0 %vm673_vm10, %v674_v18  ;;  %vm355_vm0 = vnez %v338_v48  ;;  %vm356_vm12 = vnez %v340_v49  ;;  %v598_v18 = vld [vmem:[#allocation4 + $0x20] sm:$0xff] }
  0xa9   :  { %803 = vtanh.f32 %v231_v19  ;;  %v794_v9 = vpop.eup %793  ;;  %v269_v13 = vadd.f32 0.5, %v253_v21  ;;  %735 = vmatmul.mubr.msk.bf16.vlgmr.msra.gmra.mrb[0].mxu1 %vm685_vm11, %v686_v54  ;;  %v379_v20 = vunpack.c.0.s8 %v363_v23  ;;  %v380_v25 = vunpack.c.0.s8 %v364_v4  ;;  %v600_v19 = vld [vmem:[#allocation4 + $0x30] sm:$0xff]  ;;  %v601_v21 = vld [vmem:[#allocation4 + $0x38] sm:$0xff] }
  0xaa   :  { %v796_v0 = vpop.eup %795  ;;  %v262_v2 = vmul.f32 0.5, %v794_v9  ;;  %vm1180_vm1 = vcmp.ne.s32.totalorder %v385_v63, 0  ;;  %vm1186_vm2 = vcmp.ne.s32.totalorder %v386_v17, 0  ;;  %v371_v49 = vsel %vm355_vm0, 16843009, %v830_v3 }
  0xab   :  { %v261_v32 = vmul.f32 0.5, %v796_v0  ;;  %v677_v15 = vpack.c.bf16 %v270_v31, %v269_v13  ;;  %v372_v27 = vsel %vm356_vm12, 16843009, %v830_v3  ;;  %vm688_vm3 = vmpackc.low %vm1186_vm2, %vm1180_vm1  ;;  %vm1196_vm4 = vcmp.ne.s32.totalorder %v379_v20, 0  ;;  %v599_v31 = vld [vmem:[#allocation4 + $0x28] sm:$0xff]  ;;  %v608_v0 = vld [vmem:[#allocation4 + $0x70] sm:$0xff] }
  0xac   :  { %v278_v48 = vadd.f32 0.5, %v262_v2  ;;  %vm1200_vm5 = vcmp.ne.s32.totalorder %v380_v25, 0  ;;  %v387_v34 = vunpack.c.0.s8 %v371_v49  ;;  %v388_v36 = vunpack.c.0.s8 %v372_v27  ;;  %v606_v25 = vld [vmem:[#allocation4 + $0x60] sm:$0xff]  ;;  %v607_v49 = vld [vmem:[#allocation4 + $0x68] sm:$0xff] }
  0xad   :  { %v277_v16 = vadd.f32 0.5, %v261_v32  ;;  %730 = vmatprep.mubr.msk.bf16.mxu0 %vm676_vm13, %v677_v15  ;;  %vm679_vm8 = vmpackc.low %vm1200_vm5, %vm1196_vm4 }
  0xae   :  { %v798_v33 = vpop.eup %797  ;;  %vm403_vm9 = vcmp.ne.s32.totalorder %v387_v34, 0  ;;  %vm404_vm14 = vcmp.ne.s32.totalorder %v388_v36, 0 }
  0xaf   :  { %v800_v28 = vpop.eup %799  ;;  %v256_v40 = vmul.f32 0.5, %v798_v33  ;;  %v689_v3 = vpack.c.bf16 %v278_v48, %v277_v16  ;;  %vm691_vm15 = vmpackc.low %vm404_vm14, %vm403_vm9 }
  0xb0   :  { %v255_v17 = vmul.f32 0.5, %v800_v28 }
  0xb1   :  { %v272_v37 = vadd.f32 0.5, %v256_v40  ;;  %738 = vmatprep.mubr.msk.bf16.mxu1 %vm688_vm3, %v689_v3 }
  0xb2   :  { %v802_v39 = vpop.eup %801  ;;  %v271_v41 = vadd.f32 0.5, %v255_v17 }
  0xb3   :  { %v804_v42 = vpop.eup %803  ;;  %v264_v43 = vmul.f32 0.5, %v802_v39 }
  0xb4   :  { %v263_v44 = vmul.f32 0.5, %v804_v42  ;;  %v680_v45 = vpack.c.bf16 %v272_v37, %v271_v41 }
  0xb5   :  { %v280_v38 = vadd.f32 0.5, %v264_v43 }
  0xb6   :  { %v279_v50 = vadd.f32 0.5, %v263_v44  ;;  %731 = vmatmul.mubr.msk.bf16.gmra.mrb[4].mxu0 %vm679_vm8, %v680_v45 }
  0xb8   :  { %v692_v47 = vpack.c.bf16 %v280_v38, %v279_v50 }
  0xba   :  { %739 = vmatmul.mubr.msk.bf16.gmra.mrb[4].mxu1 %vm691_vm15, %v692_v47 }
 0x17b   :  { %v728_v56 = vpop.f32.mrb[0].mxu0 }
 0x17c   :  { %v612_v59 = vadd.f32 %v728_v56, %v596_v51  ;;  %v531_v26 = vpop.f32.mrb[1].mxu0  ;;  %v736_v60 = vpop.f32.mrb[0].mxu1 }
 0x17d   :  { %v610_v29 = vadd.f32 %v594_v53, %v531_v26  ;;  %v729_v46 = vpop.f32.mrb[2].mxu0  ;;  %v620_v5 = vadd.f32 %v736_v60, %v604_v55  ;;  %v563_v6 = vpop.f32.mrb[1].mxu1 }
 0x17e   :  { %628 = vst [vmem:[#allocation4 + $0x10] sm:$0xff] %v612_v59  ;;  %v613_v11 = vadd.f32 %v729_v46, %v597_v57  ;;  %v534_v10 = vpop.f32.mrb[3].mxu0  ;;  %v618_v12 = vadd.f32 %v602_v58, %v563_v6  ;;  %v737_v22 = vpop.f32.mrb[2].mxu1 }
 0x17f   :  { %626 = vst [vmem:[#allocation4] sm:$0xff] %v610_v29  ;;  %v611_v8 = vadd.f32 %v595_v35, %v534_v10  ;;  %636 = vst [vmem:[#allocation4 + $0x50] sm:$0xff] %v620_v5  ;;  %v621_v14 = vadd.f32 %v737_v22, %v605_v61  ;;  %v566_v62 = vpop.f32.mrb[3].mxu1 }
 0x180   :  { %629 = vst [vmem:[#allocation4 + $0x18] sm:$0xff] %v613_v11  ;;  %634 = vst [vmem:[#allocation4 + $0x40] sm:$0xff] %v618_v12  ;;  %v619_v1 = vadd.f32 %v603_v7, %v566_v62 }
 0x181   :  { %627 = vst [vmem:[#allocation4 + $0x8] sm:$0xff] %v611_v8  ;;  %637 = vst [vmem:[#allocation4 + $0x58] sm:$0xff] %v621_v14 }
 0x182   :  { %635 = vst [vmem:[#allocation4 + $0x48] sm:$0xff] %v619_v1 }
 0x189   :  { %v732_v23 = vpop.f32.mrb[4].mxu0 }
 0x18a   :  { %v616_v54 = vadd.f32 %v732_v23, %v600_v19  ;;  %v547_v4 = vpop.f32.mrb[5].mxu0 }
 0x18b   :  { %v614_v9 = vadd.f32 %v598_v18, %v547_v4  ;;  %v733_v13 = vpop.f32.mrb[6].mxu0 }
 0x18c   :  { %632 = vst [vmem:[#allocation4 + $0x30] sm:$0xff] %v616_v54  ;;  %v617_v2 = vadd.f32 %v733_v13, %v601_v21  ;;  %v550_v20 = vpop.f32.mrb[7].mxu0 }
 0x18d   :  { %630 = vst [vmem:[#allocation4 + $0x20] sm:$0xff] %v614_v9  ;;  %v615_v32 = vadd.f32 %v599_v31, %v550_v20  ;;  %v740_v15 = vpop.f32.mrb[4].mxu1 }
 0x18e   :  { %633 = vst [vmem:[#allocation4 + $0x38] sm:$0xff] %v617_v2  ;;  %v624_v30 = vadd.f32 %v740_v15, %v608_v0  ;;  %v579_v48 = vpop.f32.mrb[5].mxu1 }
 0x18f   :  { %631 = vst [vmem:[#allocation4 + $0x28] sm:$0xff] %v615_v32  ;;  %v622_v27 = vadd.f32 %v606_v25, %v579_v48  ;;  %v741_v33 = vpop.f32.mrb[6].mxu1 }
 0x190   :  { %640 = vst [vmem:[#allocation4 + $0x70] sm:$0xff] %v624_v30  ;;  %v625_v16 = vadd.f32 %v741_v33, %v609_v24  ;;  %v582_v28 = vpop.f32.mrb[7].mxu1 }
 0x191   :  { %638 = vst [vmem:[#allocation4 + $0x60] sm:$0xff] %v622_v27  ;;  %v623_v40 = vadd.f32 %v607_v49, %v582_v28 }
 0x192   :  { %641 = vst [vmem:[#allocation4 + $0x78] sm:$0xff] %v625_v16 }
 0x193   :  { %639 = vst [vmem:[#allocation4 + $0x68] sm:$0xff] %v623_v40 }
 0x194 PF:  { %s831_s2 = smov [#allocation4]  }
 0x195   :  { %s647_s23 = sshll.u32 %s831_s2, 4  ;;  %s648_s23 = int_to_ptr.vmem [resolvable:$true] %s647_s23 }
 0x196   :  { %s805_s24 = scalar_lea.vmem %s648_s23, 2048  ;;  %p810_p2 = scmp.lt.s32.totalorder %s648_s23, %s648_s23 }
 0x197   :  { %p806_p1 = scmp.ne.s32.totalorder %s648_s23, %s805_s24  ;;  %p811_p3 = scmp.lt.s32.totalorder %s805_s24, %s805_s24 }
 0x199   :  { %p812_p4 = por %p811_p3, %p810_p2 }
 0x19b   :  { %p813_p5 = pnand %p812_p4, %p806_p1 }
 0x19d   :  { %816 = shalt.err (!%p813_p5)
}
 0x19e   :  { %s817_s26 = scalar_lea.hbm %s1225_s5, 2048 }
 0x19f   :  { %p818_p6 = scmp.ne.s32.totalorder %s1225_s5, %s817_s26  ;;  %p821_p7 = scmp.lt.u32.totalorder %s817_s26, %s1225_s5 }
 0x1a1   :  { %p823_p8 = pnand %p821_p7, %p818_p6 }
 0x1a3   :  { %826 = shalt.err (!%p823_p8)
}
 0x1a4   :  { %s832_s6 = smov 128   ;;  %s833_s7 = smov 8  }
 0x1a5   :  { %653 = dma.vmem_to_hbm [thread:$0]  %s648_s23, 2048, %s1225_s5, [#allocation5], %s832_s6, %s832_s6, %s833_s7  }
 0x1a6   :  { %827 = dma.done.wait [#allocation5], 2048  }
 0x1a7   :  { %828 = vsyncadd [#allocation5], 4294965248 }
 0x1a8   :  { %657 = vsyncpa [#allocation5], 1 }

</bundles_post_ra>
